<compile_context>
chip_gen: v7x
topology: tpu7x:2x2x1
jax: 0.10.0
libtpu: 0.0.40
codegen_flags: <defaults>
</compile_context>

<pallas_src>
import math

import jax
import jax.numpy as jnp
from jax.experimental import pallas as pl
from jax.experimental.pallas import tpu as pltpu


def _round_up(n, m):
    return ((n + m - 1) // m) * m


def _gate_mul_kernel(x_ref, z_ref, o_ref):
    # z_ref: (1, TD) f32 pre-noised logits.  Hard sigmoid in f32, then the
    # gate row broadcasts (sublane-broadcast) over the (TB, TD) batch tile.
    gate = jnp.clip(z_ref[...] + 0.5, 0.0, 1.0)
    o_ref[...] = x_ref[...] * gate.astype(x_ref.dtype)


def _pick_tiles(B, D, itemsize, *, budget_bytes=3 << 20, tb_cap=512):
    """Pick (TB, TD) so double-buffered x+out tiles stay ~<= 12 MiB."""
    sub = max(8, 32 // itemsize)            # sublane multiple: f32 8, bf16 16, int8 32
    # Preferred: full-row tiles -> one contiguous DMA per block and a gate row
    # that is resident for the whole inner (batch) loop.
    tb_max = (budget_bytes // max(D * itemsize, 1)) // sub * sub
    if tb_max >= sub:
        tb = min(tb_cap, tb_max)
        # v7x megacore: aim for >= 2 batch blocks so both TCs get work.
        half_b = _round_up(max(-(-B // 2), 1), sub)
        tb = min(tb, half_b)
        if B <= tb:
            tb = B                          # block == full dim (always legal)
        return tb, D
    # Huge D: block the feature axis in lane (128) multiples, modest batch tile.
    tb = B if B <= 256 else 256
    td = (budget_bytes // max(tb * itemsize, 1)) // 128 * 128
    td = max(128, min(td, _round_up(D, 128)))
    return tb, td


def feature_selector_forward(x, mu, noise, sigma, training=True):
    """x: (..., D); mu, noise: (D,).  Returns x * hard_sigmoid(mu + sigma*noise*training)."""
    orig_shape = x.shape
    D = orig_shape[-1]
    B = math.prod(orig_shape[:-1]) if len(orig_shape) > 1 else 1
    x2 = x.reshape(B, D)

    # Fold mu / noise / sigma / training into one f32 row (length-D op on host
    # side of the kernel); hard sigmoid stays inside the kernel.
    train_flag = 1.0 if training else 0.0
    z = (mu.astype(jnp.float32)
         + float(sigma) * train_flag * noise.astype(jnp.float32)).reshape(1, D)

    TB, TD = _pick_tiles(B, D, x2.dtype.itemsize)

    # Feature-block axis OUTER, batch-block axis INNER: the gate row's block
    # index is constant across the inner loop -> fetched once per column block.
    grid = (pl.cdiv(D, TD), pl.cdiv(B, TB))

    x_spec = pl.BlockSpec((TB, TD), lambda j, i: (i, j))
    z_spec = pl.BlockSpec((1, TD), lambda j, i: (0, j))
    out_spec = pl.BlockSpec((TB, TD), lambda j, i: (i, j))

    out = pl.pallas_call(
        _gate_mul_kernel,
        out_shape=jax.ShapeDtypeStruct((B, D), x2.dtype),
        grid=grid,
        in_specs=[x_spec, z_spec],
        out_specs=out_spec,
        compiler_params=pltpu.CompilerParams(
            dimension_semantics=("parallel", "parallel")),
    )(x2, z)
    return out.reshape(orig_shape)


if __name__ == "__main__":
    key = jax.random.PRNGKey(0)
    k_x, k_noise = jax.random.split(key)

    batch, input_dim = 8, 32
    sigma = 0.5

    x = jax.random.normal(k_x, (batch, input_dim), dtype=jnp.float32)
    # Parameter init mirrors the module: mu = 0.0 * randn(input_dim) -> zeros.
    mu = jnp.zeros((input_dim,), dtype=jnp.float32)
    # noise = randn(input_dim), sampled once (stands in for noise.normal_()).
    # TODO(synk): per-call in-kernel resampling via pltpu.prng_* would need the
    # seed keyed on the feature block only (not the batch block) so every batch
    # tile sees the same gate; host-side noise is passed in instead.
    noise = jax.random.normal(k_noise, (input_dim,), dtype=jnp.float32)

    # --- training path
    out = feature_selector_forward(x, mu, noise, sigma, training=True)
    jax.block_until_ready(out)
    gate = jnp.clip(mu + sigma * noise + 0.5, 0.0, 1.0)
    ref = x * gate[None, :]
    assert out.shape == x.shape
    assert jnp.allclose(out, ref, atol=1e-6), "mismatch vs reference (train)"

    # --- eval path (noise contribution zeroed)
    out_eval = feature_selector_forward(x, mu, noise, sigma, training=False)
    jax.block_until_ready(out_eval)
    ref_eval = x * jnp.clip(mu + 0.5, 0.0, 1.0)[None, :]
    assert jnp.allclose(out_eval, ref_eval, atol=1e-6), "mismatch vs reference (eval)"

    print("KERNEL_OK")
</pallas_src>

<mosaic_0001>
module attributes {stable_mosaic.version = 11 : i64} {
  func.func @_gate_mul_kernel(%arg0: i32, %arg1: i32, %arg2: memref<8x32xf32, #tpu.memory_space<vmem>>, %arg3: memref<1x32xf32, #tpu.memory_space<vmem>>, %arg4: memref<8x32xf32, #tpu.memory_space<vmem>>) attributes {dimension_semantics = [#tpu.dimension_semantics<parallel>, #tpu.dimension_semantics<parallel>], iteration_bounds = array<i64: 1, 1>, scalar_prefetch = 0 : i64, scratch_operands = 0 : i64, tpu.core_type = #tpu.core_type<tc>, window_params = [{transform_indices = @transform_0, window_bounds = array<i64: 8, 32>}, {transform_indices = @transform_1, window_bounds = array<i64: 1, 32>}, {transform_indices = @transform_2, window_bounds = array<i64: 8, 32>}]} {
    %c0 = arith.constant 0 : index
    %c0_0 = arith.constant 0 : index
    %0 = vector.load %arg3[%c0, %c0_0] : memref<1x32xf32, #tpu.memory_space<vmem>>, vector<1x32xf32>
    %cst = arith.constant 5.000000e-01 : f32
    %1 = vector.broadcast %cst : f32 to vector<1x32xf32>
    %2 = arith.addf %0, %1 : vector<1x32xf32>
    %cst_1 = arith.constant 0.000000e+00 : f32
    %cst_2 = arith.constant 1.000000e+00 : f32
    %3 = vector.broadcast %cst_1 : f32 to vector<1x32xf32>
    %4 = arith.maximumf %3, %2 : vector<1x32xf32>
    %5 = vector.broadcast %cst_2 : f32 to vector<1x32xf32>
    %6 = arith.minimumf %5, %4 : vector<1x32xf32>
    %c0_3 = arith.constant 0 : index
    %c0_4 = arith.constant 0 : index
    %7 = vector.load %arg2[%c0_3, %c0_4] : memref<8x32xf32, #tpu.memory_space<vmem>>, vector<8x32xf32>
    %8 = vector.broadcast %6 : vector<1x32xf32> to vector<8x32xf32>
    %9 = arith.mulf %7, %8 : vector<8x32xf32>
    %c0_5 = arith.constant 0 : index
    %c0_6 = arith.constant 0 : index
    %10 = vector.load %arg4[%c0_5, %c0_6] : memref<8x32xf32, #tpu.memory_space<vmem>>, vector<8x32xf32>
    tpu.vector_store %arg4[%c0_5, %c0_6], %9 {strides = array<i32>} : memref<8x32xf32, #tpu.memory_space<vmem>>, vector<8x32xf32>,
    return
  }
  func.func @transform_0(%arg0: i32, %arg1: i32) -> (i32, i32) {
    %c0_i32 = arith.constant 0 : i32
    return %arg1, %arg0 : i32, i32
  }
  func.func @transform_1(%arg0: i32, %arg1: i32) -> (i32, i32) {
    %c0_i32 = arith.constant 0 : i32
    %c0_i32_0 = arith.constant 0 : i32
    return %c0_i32, %arg0 : i32, i32
  }
  func.func @transform_2(%arg0: i32, %arg1: i32) -> (i32, i32) {
    %c0_i32 = arith.constant 0 : i32
    return %arg1, %arg0 : i32, i32
  }
}

</mosaic_0001>

<bundles_post_ra>
// kernel: tpu_custom_call.1
= control target key start
LH: loop header
LB: loop body
LE: loop exit
PB: predicated region body
PF: predicated region fallthrough
CT: control target
= control target key end

     0   :  { %7 = vsyncpa [#allocation3], 0  ;;  %s147_s0 = inlined_call_operand.hbm [shape: f32[8,32], index: 0, kind: input, shape index: {}]   ;;  %s148_s1 = inlined_call_operand.vmem [shape: f32[1,32], index: 1, kind: input, shape index: {}]   ;;  %s149_s2 = inlined_call_operand.hbm [shape: f32[8,32], index: 2, kind: output, shape index: {}]  }
   0x1   :  { %8 = vsyncpa [#allocation4], 0  ;;  %s103_s9 = smov [#allocation2]   ;;  %s55_s13 = scalar_lea.hbm %s147_s0, 128 }
   0x2   :  { %s15_s10 = sshll.u32 %s103_s9, 4  ;;  %p56_p0 = scmp.ne.s32.totalorder %s147_s0, %s55_s13  ;;  %s16_s10 = int_to_ptr.vmem [resolvable:$true] %s15_s10 }
   0x3   :  { %p59_p1 = scmp.lt.u32.totalorder %s55_s13, %s147_s0 }
   0x5   :  { %p61_p2 = pnand %p59_p1, %p56_p0 }
   0x7   :  { %64 = shalt.err (!%p61_p2)
}
   0x8   :  { %s65_s18 = scalar_lea.vmem %s16_s10, 128  ;;  %p70_p4 = scmp.lt.s32.totalorder %s16_s10, %s16_s10 }
   0x9   :  { %p66_p3 = scmp.ne.s32.totalorder %s16_s10, %s65_s18  ;;  %p71_p5 = scmp.lt.s32.totalorder %s65_s18, %s65_s18 }
   0xb   :  { %p72_p6 = por %p71_p5, %p70_p4 }
   0xd   :  { %p73_p7 = pnand %p72_p6, %p66_p3 }
   0xf   :  { %76 = shalt.err (!%p73_p7)
}
  0x10   :  { %18 = dma.hbm_to_vmem [thread:$0]  %s147_s0, 128, %s16_s10, [#allocation3]  }
  0x11   :  { %99 = dma.done.wait [#allocation3], 128  }
  0x12   :  { %100 = vsyncadd [#allocation3], 4294967168  ;;  %v30_v0 = vlaneseq  ;;  %v24_v2 = vld [vmem:[%s148_s1] sm:$0x1]  ;;  %s104_s23 = smov [#allocation5]   ;;  %vm36_vm0 = vcmask 261120  }
  0x13   :  { %v25_v3 = vadd.f32 0.5, %v24_v2  ;;  %v28_v7 = vld [vmem:[#allocation2] sm:$0xff]  ;;  %s44_s24 = sshll.u32 %s104_s23, 4  ;;  %s45_s24 = int_to_ptr.vmem [resolvable:$true] %s44_s24 }
  0x14   :  { %v31_v1 = vshrl.u32 %v30_v0, 7  ;;  %s77_s0 = scalar_lea.vmem %s45_s24, 128  ;;  %p82_p9 = scmp.lt.s32.totalorder %s45_s24, %s45_s24 }
  0x15   :  { %v26_v4 = vmax.f32 %v25_v3, 0.0  ;;  %p78_p8 = scmp.ne.s32.totalorder %s45_s24, %s77_s0  ;;  %p83_p10 = scmp.lt.s32.totalorder %s77_s0, %s77_s0 }
  0x16   :  { %v32_v5 = vsub.s32 0, %v31_v1 }
  0x17   :  { %v27_v6 = vmin.f32 %v26_v4, 1.0  ;;  %p84_p11 = por %p83_p10, %p82_p9 }
  0x19   :  { %v33_v8 = vrot.slane %v27_v6, %v32_v5  ;;  %p85_p12 = pnand %p84_p11, %p78_p8 }
  0x1b   :  { %v35_v9 = vmul.f32 %v33_v8, %v28_v7 }
  0x1d   :  { %37 = vst.msk [vmem:[#allocation5] sm:$0xff] %vm36_vm0, %v35_v9 }
  0x1e   :  { %88 = shalt.err (!%p85_p12)
}
  0x1f   :  { %s89_s26 = scalar_lea.hbm %s149_s2, 128 }
  0x20   :  { %p90_p13 = scmp.ne.s32.totalorder %s149_s2, %s89_s26  ;;  %p93_p0 = scmp.lt.u32.totalorder %s89_s26, %s149_s2 }
  0x22   :  { %p95_p1 = pnand %p93_p0, %p90_p13 }
  0x24   :  { %98 = shalt.err (!%p95_p1)
}
  0x25   :  { %47 = dma.vmem_to_hbm [thread:$0]  %s45_s24, 128, %s149_s2, [#allocation4]  }
  0x26   :  { %101 = dma.done.wait [#allocation4], 128  }
  0x27   :  { %102 = vsyncadd [#allocation4], 4294967168 }
  0x28   :  { %51 = vsyncpa [#allocation3], 1 }
  0x29   :  { %52 = vsyncpa [#allocation4], 1 }

</bundles_post_ra>
